<compile_context>
chip_gen: v7x
topology: tpu7x:2x2x1
jax: 0.10.0
libtpu: 0.0.40
codegen_flags: <defaults>
</compile_context>

<pallas_src>
import functools

import jax
import jax.numpy as jnp
from jax.experimental import pallas as pl
from jax.experimental.pallas import tpu as pltpu


def _mish(y):
    """y * tanh(softplus(y)): one exp + one approx reciprocal per element (stable)."""
    t = jnp.exp(-jnp.abs(y))
    pos = y >= 0.0
    #  y >= 0: tanh(sp) = (1 + 2t)   / (1 + 2t + 2t^2)
    #  y <  0: tanh(sp) = (t^2 + 2t) / (t^2 + 2t + 2)
    num = jnp.where(pos, 1.0 + 2.0 * t, t * (t + 2.0))
    den = num + jnp.where(pos, 2.0 * t * t, 2.0)
    return y * num * pl.reciprocal(den, approx=True)


def _mlp_kernel(*refs, n_layers: int, matmul_dtype):
    # refs = (xT_ref, w0, b0, w1, b1, ..., w_{L-1}, b_{L-1}, oT_ref)
    xT_ref = refs[0]
    oT_ref = refs[-1]
    layer_refs = refs[1:-1]

    x = xT_ref[...]                       # (Din, tile_B) — batch on the lane axis
    for li in range(n_layers):
        w = layer_refs[2 * li][...]       # (Dout, Din) — PyTorch weight layout
        b = layer_refs[2 * li + 1][...]   # (Dout, 1)   — lane-broadcast bias
        y = jnp.dot(w.astype(matmul_dtype), x.astype(matmul_dtype),
                    preferred_element_type=jnp.float32) + b
        if li < n_layers - 1:
            y = _mish(y)                  # elementwise work stays f32 on all chips
        x = y
    oT_ref[...] = x.astype(oT_ref.dtype)


def _round_up(x, m):
    return ((x + m - 1) // m) * m


def _largest_divisor_leq(n, cap):
    cap = max(1, min(cap, n))
    for d in range(cap, 0, -1):
        if n % d == 0:
            return d
    return 1


def _vmem_capacity_bytes():
    try:
        return int(pltpu.get_tpu_info().vmem_capacity_bytes)
    except Exception:
        return 64 * 1024 * 1024           # v7x physical size = safe lower bound


def _choose_batch_tile(B, dims, target_lanes, vmem_budget):
    """Pick (tile_B, Bp): lane-dense tiles, divisor of Bp, VMEM-aware, >=2 steps."""
    if B <= 128:
        return B, B                       # single full block; no padding needed
    Bp = _round_up(B, 128)
    units = Bp // 128
    # VMEM per 128-lane column: double-buffered in/out blocks + f32 intermediates.
    bytes_per_unit = 128 * 4 * (2 * (dims[0] + dims[-1]) + sum(dims[1:]))
    cap_units = max(1, (vmem_budget // 2) // bytes_per_unit)
    cap_units = min(cap_units, max(1, target_lanes // 128))
    tile_units = _largest_divisor_leq(units, cap_units)
    if tile_units == units and units >= 2:
        # Keep >= 2 grid steps so the "parallel" axis can span both v7x TensorCores.
        tile_units = _largest_divisor_leq(units, max(1, units // 2))
    return tile_units * 128, Bp


def mlp_forward(params, x, *, matmul_dtype=jnp.bfloat16, target_tile_lanes=16384):
    """Fused MLP forward: Linear+Mish for all but the last layer, Linear at the end."""
    B, Din = x.shape
    n_layers = len(params)
    dims = [Din] + [w.shape[0] for (w, _) in params]
    Dout = dims[-1]

    vmem_limit = (_vmem_capacity_bytes() * 3) // 4   # explicit per-generation budget
    tile_b, Bp = _choose_batch_tile(B, dims, target_tile_lanes, vmem_limit)

    xT = x.T                                         # (Din, B): batch -> lanes
    if Bp != B:
        # Only hit when B > 128 and B % 128 != 0 (tile always divides Bp otherwise).
        # TODO(synk): mask the ragged last block in-kernel to avoid this pad copy.
        xT = jnp.pad(xT, ((0, 0), (0, Bp - B)))

    in_specs = [pl.BlockSpec((Din, tile_b), lambda i: (0, i))]
    args = [xT]
    for (w, b) in params:
        dout, din = w.shape
        in_specs.append(pl.BlockSpec((dout, din), lambda i: (0, 0)))
        in_specs.append(pl.BlockSpec((dout, 1), lambda i: (0, 0)))
        args.append(w)
        args.append(b)                               # already shaped (dout, 1)

    kernel = functools.partial(_mlp_kernel, n_layers=n_layers,
                               matmul_dtype=matmul_dtype)
    outT = pl.pallas_call(
        kernel,
        out_shape=jax.ShapeDtypeStruct((Dout, Bp), x.dtype),
        grid=(Bp // tile_b,),
        in_specs=in_specs,
        out_specs=pl.BlockSpec((Dout, tile_b), lambda i: (0, i)),
        compiler_params=pltpu.CompilerParams(
            dimension_semantics=("parallel",),
            vmem_limit_bytes=int(vmem_limit)),
    )(*args)
    return outT[:, :B].T


def init_mlp_params(key, dims):
    """Deterministic init mirroring nn.Linear (uniform +/- 1/sqrt(fan_in)).

    Weights kept in PyTorch (out_features, in_features) layout; biases (out, 1).
    """
    params = []
    for i in range(len(dims) - 1):
        key, kw, kb = jax.random.split(key, 3)
        fan_in, fan_out = dims[i], dims[i + 1]
        bound = 1.0 / jnp.sqrt(jnp.float32(fan_in))
        w = jax.random.uniform(kw, (fan_out, fan_in), jnp.float32, -bound, bound)
        b = jax.random.uniform(kb, (fan_out, 1), jnp.float32, -bound, bound)
        params.append((w, b))
    return params


if __name__ == "__main__":
    key = jax.random.PRNGKey(0)
    dims = [16, 32, 32, 8]
    batch = 2   # matches the original module usage; wrapper handles any batch

    key, kx, kp = jax.random.split(key, 3)
    x = jax.random.normal(kx, (batch, dims[0]), jnp.float32)
    params = init_mlp_params(kp, dims)

    # plain-JAX reference (exact softplus/tanh Mish, full f32)
    ref = x
    for i, (w, b) in enumerate(params):
        ref = ref @ w.T + b[:, 0]
        if i < len(params) - 1:
            ref = ref * jnp.tanh(jax.nn.softplus(ref))

    # f32-matmul path: tight check (only approx reciprocal differs from reference)
    out_f32 = jax.block_until_ready(
        mlp_forward(params, x, matmul_dtype=jnp.float32))
    assert out_f32.shape == (batch, dims[-1])
    assert jnp.allclose(out_f32, ref, atol=1e-2, rtol=1e-2), (
        float(jnp.max(jnp.abs(out_f32 - ref))))

    # default bf16-MXU path (v6e/v7x native): looser numeric check
    out_bf16 = jax.block_until_ready(mlp_forward(params, x))
    assert out_bf16.shape == (batch, dims[-1])
    assert jnp.allclose(out_bf16, ref, atol=1e-1, rtol=1e-1), (
        float(jnp.max(jnp.abs(out_bf16 - ref))))

    print("KERNEL_OK")
</pallas_src>

<mosaic_0001>
module attributes {stable_mosaic.version = 11 : i64} {
  func.func @_mlp_kernel(%arg0: i32, %arg1: memref<16x2xf32, #tpu.memory_space<vmem>>, %arg2: memref<32x16xf32, #tpu.memory_space<vmem>>, %arg3: memref<32x1xf32, #tpu.memory_space<vmem>>, %arg4: memref<32x32xf32, #tpu.memory_space<vmem>>, %arg5: memref<32x1xf32, #tpu.memory_space<vmem>>, %arg6: memref<8x32xf32, #tpu.memory_space<vmem>>, %arg7: memref<8x1xf32, #tpu.memory_space<vmem>>, %arg8: memref<8x2xf32, #tpu.memory_space<vmem>>) attributes {dimension_semantics = [#tpu.dimension_semantics<parallel>], iteration_bounds = array<i64: 1>, scalar_prefetch = 0 : i64, scratch_operands = 0 : i64, tpu.core_type = #tpu.core_type<tc>, window_params = [{transform_indices = @transform_0, window_bounds = array<i64: 16, 2>}, {pipeline_mode = #tpu.pipeline_mode<synchronous>, transform_indices = @transform_1, window_bounds = array<i64: 32, 16>}, {pipeline_mode = #tpu.pipeline_mode<synchronous>, transform_indices = @transform_2, window_bounds = array<i64: 32, 1>}, {pipeline_mode = #tpu.pipeline_mode<synchronous>, transform_indices = @transform_3, window_bounds = array<i64: 32, 32>}, {pipeline_mode = #tpu.pipeline_mode<synchronous>, transform_indices = @transform_4, window_bounds = array<i64: 32, 1>}, {pipeline_mode = #tpu.pipeline_mode<synchronous>, transform_indices = @transform_5, window_bounds = array<i64: 8, 32>}, {pipeline_mode = #tpu.pipeline_mode<synchronous>, transform_indices = @transform_6, window_bounds = array<i64: 8, 1>}, {transform_indices = @transform_7, window_bounds = array<i64: 8, 2>}]} {
    %c0 = arith.constant 0 : index
    %c0_0 = arith.constant 0 : index
    %0 = vector.load %arg1[%c0, %c0_0] : memref<16x2xf32, #tpu.memory_space<vmem>>, vector<16x2xf32>
    %c0_1 = arith.constant 0 : index
    %c0_2 = arith.constant 0 : index
    %1 = vector.load %arg2[%c0_1, %c0_2] : memref<32x16xf32, #tpu.memory_space<vmem>>, vector<32x16xf32>
    %c0_3 = arith.constant 0 : index
    %c0_4 = arith.constant 0 : index
    %2 = vector.load %arg3[%c0_3, %c0_4] : memref<32x1xf32, #tpu.memory_space<vmem>>, vector<32x1xf32>
    %cst = arith.constant dense<0.000000e+00> : vector<32x2xf32>
    %3 = tpu.matmul %1, %0, %cst {dimension_numbers = #tpu.dot_dimension_numbers<[1], [0], [0], [1], [0, 0, 1, 1], [], []>} : vector<32x16xf32>, vector<16x2xf32>, vector<32x2xf32> -> vector<32x2xf32>
    %4 = vector.broadcast %2 : vector<32x1xf32> to vector<32x2xf32>
    %5 = arith.addf %3, %4 : vector<32x2xf32>
    %6 = math.absf %5 : vector<32x2xf32>
    %cst_5 = arith.constant 0.000000e+00 : f32
    %7 = vector.broadcast %cst_5 : f32 to vector<32x2xf32>
    %8 = arith.subf %7, %6 : vector<32x2xf32>
    %9 = math.exp %8 : vector<32x2xf32>
    %cst_6 = arith.constant 0.000000e+00 : f32
    %10 = vector.broadcast %cst_6 : f32 to vector<32x2xf32>
    %11 = arith.cmpf oge, %5, %10 : vector<32x2xf32>
    %cst_7 = arith.constant 2.000000e+00 : f32
    %12 = vector.broadcast %cst_7 : f32 to vector<32x2xf32>
    %13 = arith.mulf %12, %9 : vector<32x2xf32>
    %cst_8 = arith.constant 1.000000e+00 : f32
    %14 = vector.broadcast %cst_8 : f32 to vector<32x2xf32>
    %15 = arith.addf %14, %13 : vector<32x2xf32>
    %cst_9 = arith.constant 2.000000e+00 : f32
    %16 = vector.broadcast %cst_9 : f32 to vector<32x2xf32>
    %17 = arith.addf %9, %16 : vector<32x2xf32>
    %18 = arith.mulf %9, %17 : vector<32x2xf32>
    %19 = arith.select %11, %15, %18 : vector<32x2xi1>, vector<32x2xf32>
    %cst_10 = arith.constant 2.000000e+00 : f32
    %20 = vector.broadcast %cst_10 : f32 to vector<32x2xf32>
    %21 = arith.mulf %20, %9 : vector<32x2xf32>
    %22 = arith.mulf %21, %9 : vector<32x2xf32>
    %cst_11 = arith.constant 2.000000e+00 : f32
    %23 = vector.broadcast %cst_11 : f32 to vector<32x2xf32>
    %24 = arith.select %11, %22, %23 : vector<32x2xi1>, vector<32x2xf32>
    %25 = arith.addf %19, %24 : vector<32x2xf32>
    %26 = arith.mulf %5, %19 : vector<32x2xf32>
    %27 = tpu.reciprocal %25 {approx = true} : vector<32x2xf32> -> vector<32x2xf32>
    %28 = arith.mulf %26, %27 : vector<32x2xf32>
    %c0_12 = arith.constant 0 : index
    %c0_13 = arith.constant 0 : index
    %29 = vector.load %arg4[%c0_12, %c0_13] : memref<32x32xf32, #tpu.memory_space<vmem>>, vector<32x32xf32>
    %c0_14 = arith.constant 0 : index
    %c0_15 = arith.constant 0 : index
    %30 = vector.load %arg5[%c0_14, %c0_15] : memref<32x1xf32, #tpu.memory_space<vmem>>, vector<32x1xf32>
    %cst_16 = arith.constant dense<0.000000e+00> : vector<32x2xf32>
    %31 = tpu.matmul %29, %28, %cst_16 {dimension_numbers = #tpu.dot_dimension_numbers<[1], [0], [0], [1], [0, 0, 1, 1], [], []>} : vector<32x32xf32>, vector<32x2xf32>, vector<32x2xf32> -> vector<32x2xf32>
    %32 = vector.broadcast %30 : vector<32x1xf32> to vector<32x2xf32>
    %33 = arith.addf %31, %32 : vector<32x2xf32>
    %34 = math.absf %33 : vector<32x2xf32>
    %cst_17 = arith.constant 0.000000e+00 : f32
    %35 = vector.broadcast %cst_17 : f32 to vector<32x2xf32>
    %36 = arith.subf %35, %34 : vector<32x2xf32>
    %37 = math.exp %36 : vector<32x2xf32>
    %cst_18 = arith.constant 0.000000e+00 : f32
    %38 = vector.broadcast %cst_18 : f32 to vector<32x2xf32>
    %39 = arith.cmpf oge, %33, %38 : vector<32x2xf32>
    %cst_19 = arith.constant 2.000000e+00 : f32
    %40 = vector.broadcast %cst_19 : f32 to vector<32x2xf32>
    %41 = arith.mulf %40, %37 : vector<32x2xf32>
    %cst_20 = arith.constant 1.000000e+00 : f32
    %42 = vector.broadcast %cst_20 : f32 to vector<32x2xf32>
    %43 = arith.addf %42, %41 : vector<32x2xf32>
    %cst_21 = arith.constant 2.000000e+00 : f32
    %44 = vector.broadcast %cst_21 : f32 to vector<32x2xf32>
    %45 = arith.addf %37, %44 : vector<32x2xf32>
    %46 = arith.mulf %37, %45 : vector<32x2xf32>
    %47 = arith.select %39, %43, %46 : vector<32x2xi1>, vector<32x2xf32>
    %cst_22 = arith.constant 2.000000e+00 : f32
    %48 = vector.broadcast %cst_22 : f32 to vector<32x2xf32>
    %49 = arith.mulf %48, %37 : vector<32x2xf32>
    %50 = arith.mulf %49, %37 : vector<32x2xf32>
    %cst_23 = arith.constant 2.000000e+00 : f32
    %51 = vector.broadcast %cst_23 : f32 to vector<32x2xf32>
    %52 = arith.select %39, %50, %51 : vector<32x2xi1>, vector<32x2xf32>
    %53 = arith.addf %47, %52 : vector<32x2xf32>
    %54 = arith.mulf %33, %47 : vector<32x2xf32>
    %55 = tpu.reciprocal %53 {approx = true} : vector<32x2xf32> -> vector<32x2xf32>
    %56 = arith.mulf %54, %55 : vector<32x2xf32>
    %c0_24 = arith.constant 0 : index
    %c0_25 = arith.constant 0 : index
    %57 = vector.load %arg6[%c0_24, %c0_25] : memref<8x32xf32, #tpu.memory_space<vmem>>, vector<8x32xf32>
    %c0_26 = arith.constant 0 : index
    %c0_27 = arith.constant 0 : index
    %58 = vector.load %arg7[%c0_26, %c0_27] : memref<8x1xf32, #tpu.memory_space<vmem>>, vector<8x1xf32>
    %cst_28 = arith.constant dense<0.000000e+00> : vector<8x2xf32>
    %59 = tpu.matmul %57, %56, %cst_28 {dimension_numbers = #tpu.dot_dimension_numbers<[1], [0], [0], [1], [0, 0, 1, 1], [], []>} : vector<8x32xf32>, vector<32x2xf32>, vector<8x2xf32> -> vector<8x2xf32>
    %60 = vector.broadcast %58 : vector<8x1xf32> to vector<8x2xf32>
    %61 = arith.addf %59, %60 : vector<8x2xf32>
    %c0_29 = arith.constant 0 : index
    %c0_30 = arith.constant 0 : index
    %62 = vector.load %arg8[%c0_29, %c0_30] : memref<8x2xf32, #tpu.memory_space<vmem>>, vector<8x2xf32>
    tpu.vector_store %arg8[%c0_29, %c0_30], %61 {strides = array<i32>} : memref<8x2xf32, #tpu.memory_space<vmem>>, vector<8x2xf32>,
    return
  }
  func.func @transform_0(%arg0: i32) -> (i32, i32) {
    %c0_i32 = arith.constant 0 : i32
    %c0_i32_0 = arith.constant 0 : i32
    return %c0_i32, %arg0 : i32, i32
  }
  func.func @transform_1(%arg0: i32) -> (i32, i32) {
    %c0_i32 = arith.constant 0 : i32
    %c0_i32_0 = arith.constant 0 : i32
    %c0_i32_1 = arith.constant 0 : i32
    return %c0_i32, %c0_i32_0 : i32, i32
  }
  func.func @transform_2(%arg0: i32) -> (i32, i32) {
    %c0_i32 = arith.constant 0 : i32
    %c0_i32_0 = arith.constant 0 : i32
    %c0_i32_1 = arith.constant 0 : i32
    return %c0_i32, %c0_i32_0 : i32, i32
  }
  func.func @transform_3(%arg0: i32) -> (i32, i32) {
    %c0_i32 = arith.constant 0 : i32
    %c0_i32_0 = arith.constant 0 : i32
    %c0_i32_1 = arith.constant 0 : i32
    return %c0_i32, %c0_i32_0 : i32, i32
  }
  func.func @transform_4(%arg0: i32) -> (i32, i32) {
    %c0_i32 = arith.constant 0 : i32
    %c0_i32_0 = arith.constant 0 : i32
    %c0_i32_1 = arith.constant 0 : i32
    return %c0_i32, %c0_i32_0 : i32, i32
  }
  func.func @transform_5(%arg0: i32) -> (i32, i32) {
    %c0_i32 = arith.constant 0 : i32
    %c0_i32_0 = arith.constant 0 : i32
    %c0_i32_1 = arith.constant 0 : i32
    return %c0_i32, %c0_i32_0 : i32, i32
  }
  func.func @transform_6(%arg0: i32) -> (i32, i32) {
    %c0_i32 = arith.constant 0 : i32
    %c0_i32_0 = arith.constant 0 : i32
    %c0_i32_1 = arith.constant 0 : i32
    return %c0_i32, %c0_i32_0 : i32, i32
  }
  func.func @transform_7(%arg0: i32) -> (i32, i32) {
    %c0_i32 = arith.constant 0 : i32
    %c0_i32_0 = arith.constant 0 : i32
    return %c0_i32, %arg0 : i32, i32
  }
}

</mosaic_0001>

<bundles_post_ra>
// kernel: tpu_custom_call.1
= control target key start
LH: loop header
LB: loop body
LE: loop exit
PB: predicated region body
PF: predicated region fallthrough
CT: control target
= control target key end

     0   :  { %vm56_vm0 = vcmask 130048   ;;  %v613_v3 = vmov 0   ;;  %vm246_vm1 = vcmask 261120   ;;  %vm615_vm6 = vmmov 0   ;;  %s771_s0 = inlined_call_operand.vmem [shape: f32[16,2], index: 0, kind: input, shape index: {}]   ;;  %s772_s1 = inlined_call_operand.vmem [shape: f32[32,16], index: 1, kind: input, shape index: {}]   ;;  %s773_s2 = inlined_call_operand.vmem [shape: f32[32,1], index: 2, kind: input, shape index: {}]   ;;  %s774_s4 = inlined_call_operand.vmem [shape: f32[32,1], index: 4, kind: input, shape index: {}]   ;;  %s775_s6 = inlined_call_operand.vmem [shape: f32[8,1], index: 6, kind: input, shape index: {}]   ;;  %s776_s3 = inlined_call_operand.vmem [shape: f32[32,32], index: 3, kind: input, shape index: {}]   ;;  %s777_s5 = inlined_call_operand.vmem [shape: f32[8,32], index: 5, kind: input, shape index: {}]   ;;  %s778_s7 = inlined_call_operand.vmem [shape: f32[8,2], index: 7, kind: output, shape index: {}]  }
   0x1   :  { %v26_v0 = vld [vmem:[%s771_s0] sm:$0xff]  ;;  %v27_v1 = vld [vmem:[%s771_s0 + $0x8] sm:$0xff]  ;;  %579 = vset.pattern.permute.xlu0 %v613_v3  ;;  %580 = vset.pattern.permute.xlu1 %v613_v3  ;;  %v34_v6 = vld [vmem:[%s773_s2 + $0x10] sm:$0xff]  ;;  %vm488_vm11 = vcmask 15360  }
   0x2   :  { %v28_v2 = vld [vmem:[%s772_s1] sm:$0xff]  ;;  %v557_v4 = vpack.c.bf16 %v27_v1, %v26_v0  ;;  %v29_v7 = vld [vmem:[%s772_s1 + $0x8] sm:$0xff]  ;;  %48 = vperm.xlu1 %580, %v34_v6   ;;  %v30_v9 = vld [vmem:[%s772_s1 + $0x10] sm:$0xff] }
   0x3   :  { %526 = vmatprep.mubr.msk.f32.mxu0 %vm56_vm0, %v28_v2  ;;  %v32_v5 = vld [vmem:[%s773_s2] sm:$0xff]  ;;  %v33_v8 = vld [vmem:[%s773_s2 + $0x8] sm:$0xff]  ;;  %v35_v10 = vld [vmem:[%s773_s2 + $0x18] sm:$0xff] }
   0x4   :  { %558 = vmatprep.subr.bf16.mxu0 %v557_v4  ;;  %38 = vperm.xlu0 %579, %v32_v5   ;;  %v31_v11 = vld [vmem:[%s772_s1 + $0x18] sm:$0xff]  ;;  %v222_v12 = vld [vmem:[%s774_s4] sm:$0xff]  ;;  %v223_v13 = vld [vmem:[%s774_s4 + $0x8] sm:$0xff] }
   0x5   :  { %560 = vmatpush3.bf16.msra.mxu0 %v557_v4  ;;  %v224_v14 = vld [vmem:[%s774_s4 + $0x10] sm:$0xff]  ;;  %v225_v15 = vld [vmem:[%s774_s4 + $0x18] sm:$0xff]  ;;  %v409_v16 = vld [vmem:[%s775_s6] sm:$0xff] }
   0x6   :  { %53 = vperm.xlu1 %580, %v35_v10   ;;  %v218_v17 = vld [vmem:[%s776_s3] sm:$0xff] }
   0x7   :  { %540 = vmatprep.mubr.msk.f32.mxu1 %vm246_vm1, %v218_v17 }
   0x8   :  { %527 = vmatmul.mubr.msk.f32.vlgmr.msra.gmra.mrb[0].mxu0 %vm56_vm0, %v29_v7  ;;  %43 = vperm.xlu0 %579, %v33_v8  }
   0x9   :  { %529 = vmatprep.mubr.msk.f32.mxu0 %vm56_vm0, %v30_v9 }
   0xa   :  { %233 = vperm.xlu1 %580, %v223_v13  }
   0xc   :  { %530 = vmatmul.mubr.msk.f32.gmra.mrb[2].mxu0 %vm56_vm0, %v31_v11  ;;  %228 = vperm.xlu0 %579, %v222_v12  }
   0xe   :  { %243 = vperm.xlu1 %580, %v225_v15  }
  0x10   :  { %238 = vperm.xlu0 %579, %v224_v14  }
  0x14   :  { %412 = vperm.xlu0 %579, %v409_v16  }
  0x81   :  { %v49_v19 = vpop.permute.xlu1 %48 }
  0x83   :  { %v39_v18 = vpop.permute.xlu0 %38 }
  0x85   :  { %v54_v26 = vpop.permute.xlu1 %53 }
  0x87   :  { %v44_v20 = vpop.permute.xlu0 %43 }
  0xdb   :  { %v528_v21 = vpop.f32.mrb[0].mxu0 }
  0xdc   :  { %v710_v22 = vadd.f32 %v528_v21, %v44_v20  ;;  %v135_v23 = vpop.f32.mrb[1].mxu0 }
  0xdd   :  { %v712_v24 = vadd.f32 %v135_v23, %v39_v18 }
  0xde   :  { %v155_v25 = vand.u32 2147483647, %v710_v22  ;;  %vm171_vm2 = vcmp.ge.f32.partialorder %v710_v22, 0.0 }
  0xdf   :  { %v154_v27 = vand.u32 2147483647, %v712_v24  ;;  %v531_v28 = vpop.f32.mrb[2].mxu0  ;;  %vm170_vm3 = vcmp.ge.f32.partialorder %v712_v24, 0.0 }
  0xe0   :  { %v159_v29 = vsub.f32 0.0, %v155_v25  ;;  %v716_v30 = vadd.f32 %v531_v28, %v54_v26  ;;  %v145_v31 = vpop.f32.mrb[3].mxu0 }
  0xe1   :  { %v158_v32 = vsub.f32 0.0, %v154_v27  ;;  %v718_v33 = vadd.f32 %v145_v31, %v49_v19  ;;  %v614_v31 = vmov 0.0|0.0  }
  0xe2   :  { %v164_v34 = vmul.f32 1.442695, %v159_v29  ;;  %v157_v35 = vand.u32 2147483647, %v716_v30  ;;  %vm173_vm4 = vcmp.ge.f32.partialorder %v716_v30, 0.0  ;;  %569 = vmatprep.subr.bf16.mxu0 %v614_v31 }
  0xe3   :  { %v162_v36 = vmul.f32 1.442695, %v158_v32  ;;  %v156_v37 = vand.u32 2147483647, %v718_v33  ;;  %vm172_vm5 = vcmp.ge.f32.partialorder %v718_v33, 0.0  ;;  %v616_v32 = vmov 0.0  }
  0xe4   :  { %581 = vpow2.f32 %v164_v34  ;;  %v161_v38 = vsub.f32 0.0, %v157_v35  ;;  %554 = vmatprep.mubr.msk.f32.mxu0 %vm615_vm6, %v616_v32  ;;  %v229_v34 = vpop.permute.xlu0 %228 }
  0xe5   :  { %583 = vpow2.f32 %v162_v36  ;;  %v160_v39 = vsub.f32 0.0, %v156_v37 }
  0xe6   :  { %v168_v40 = vmul.f32 1.442695, %v161_v38 }
  0xe7   :  { %v166_v41 = vmul.f32 1.442695, %v160_v39 }
  0xe8   :  { %585 = vpow2.f32 %v168_v40 }
  0xe9   :  { %587 = vpow2.f32 %v166_v41 }
  0xee   :  { %v582_v42 = vpop.eup %581 }
  0xef   :  { %v584_v43 = vpop.eup %583  ;;  %v175_v44 = vmul.f32 2.0, %v582_v42  ;;  %v183_v45 = vadd.f32 2.0, %v582_v42 }
  0xf0   :  { %v174_v46 = vmul.f32 2.0, %v584_v43  ;;  %v182_v47 = vadd.f32 2.0, %v584_v43 }
  0xf1   :  { %v179_v48 = vadd.f32 1.0, %v175_v44  ;;  %v187_v49 = vmul.f32 %v582_v42, %v183_v45  ;;  %v195_v50 = vmul.f32 %v582_v42, %v175_v44 }
  0xf2   :  { %v586_v51 = vpop.eup %585  ;;  %v178_v52 = vadd.f32 1.0, %v174_v46  ;;  %v186_v53 = vmul.f32 %v584_v43, %v182_v47  ;;  %v194_v54 = vmul.f32 %v584_v43, %v174_v46  ;;  %v239_v43 = vpop.permute.xlu0 %238 }
  0xf3   :  { %v588_v55 = vpop.eup %587  ;;  %v191_v56 = vsel %vm171_vm2, %v179_v48, %v187_v49  ;;  %v199_v57 = vsel %vm171_vm2, %v195_v50, 2.0  ;;  %v177_v58 = vmul.f32 2.0, %v586_v51  ;;  %v185_v59 = vadd.f32 2.0, %v586_v51 }
  0xf4   :  { %v203_v60 = vadd.f32 %v199_v57, %v191_v56  ;;  %v190_v61 = vsel %vm170_vm3, %v178_v52, %v186_v53  ;;  %v198_v62 = vsel %vm170_vm3, %v194_v54, 2.0  ;;  %v176_v3 = vmul.f32 2.0, %v588_v55 }
  0xf5   :  { %v202_v63 = vadd.f32 %v198_v62, %v190_v61  ;;  %v181_v0 = vadd.f32 1.0, %v177_v58  ;;  %v189_v1 = vmul.f32 %v586_v51, %v185_v59  ;;  %v197_v2 = vmul.f32 %v586_v51, %v177_v58 }
  0xf6   :  { %589 = vrcp.f32 %v203_v60  ;;  %v184_v4 = vadd.f32 2.0, %v588_v55  ;;  %v180_v7 = vadd.f32 1.0, %v176_v3  ;;  %v196_v10 = vmul.f32 %v588_v55, %v176_v3 }
  0xf7   :  { %591 = vrcp.f32 %v202_v63  ;;  %v193_v5 = vsel %vm173_vm4, %v181_v0, %v189_v1  ;;  %v201_v6 = vsel %vm173_vm4, %v197_v2, 2.0  ;;  %v207_v14 = vmul.f32 %v191_v56, %v710_v22  ;;  %v219_v22 = vld [vmem:[%s776_s3 + $0x8] sm:$0xff] }
  0xf8   :  { %v188_v8 = vmul.f32 %v588_v55, %v184_v4  ;;  %v205_v9 = vadd.f32 %v201_v6, %v193_v5  ;;  %v200_v12 = vsel %vm172_vm5, %v196_v10, 2.0  ;;  %v206_v16 = vmul.f32 %v190_v61, %v712_v24  ;;  %v220_v24 = vld [vmem:[%s776_s3 + $0x10] sm:$0xff] }
  0xf9   :  { %v209_v23 = vmul.f32 %v193_v5, %v716_v30  ;;  %v221_v30 = vld [vmem:[%s776_s3 + $0x18] sm:$0xff] }
  0xfa   :  { %v192_v11 = vsel %vm172_vm5, %v180_v7, %v188_v8  ;;  %593 = vrcp.f32 %v205_v9 }
  0xfb   :  { %v204_v13 = vadd.f32 %v200_v12, %v192_v11  ;;  %v208_v25 = vmul.f32 %v192_v11, %v718_v33  ;;  %v234_v33 = vpop.permute.xlu1 %233 }
  0xfd   :  { %595 = vrcp.f32 %v204_v13 }
  0xff   :  { %v244_v40 = vpop.permute.xlu1 %243 }
 0x100   :  { %v590_v15 = vpop.eup %589 }
 0x101   :  { %v592_v17 = vpop.eup %591  ;;  %v215_v18 = vmul.f32 %v590_v15, %v207_v14 }
 0x102   :  { %v214_v19 = vmul.f32 %v592_v17, %v206_v16 }
 0x104   :  { %v561_v20 = vpack.c.bf16 %v215_v18, %v214_v19  ;;  %v594_v21 = vpop.eup %593 }
 0x105   :  { %v217_v26 = vmul.f32 %v594_v21, %v209_v23 }
 0x106   :  { %562 = vmatprep.subr.bf16.mxu1 %v561_v20 }
 0x107   :  { %564 = vmatpush3.bf16.msra.mxu1 %v561_v20  ;;  %v596_v27 = vpop.eup %595 }
 0x108   :  { %v216_v28 = vmul.f32 %v596_v27, %v208_v25 }
 0x10a   :  { %v565_v29 = vpack.c.bf16 %v217_v26, %v216_v28 }
 0x10c   :  { %566 = vmatprep.subr.bf16.mxu1 %v565_v29 }
 0x10d   :  { %568 = vmatpush3.bf16.msra.mxu1 %v565_v29 }
 0x110   :  { %541 = vmatmul.mubr.msk.f32.vlgmr.msra.gmra.mrb[0].mxu1 %vm246_vm1, %v219_v22 }
 0x111   :  { %543 = vmatprep.mubr.msk.f32.mxu1 %vm246_vm1, %v220_v24 }
 0x114   :  { %544 = vmatmul.mubr.msk.f32.gmra.mrb[2].mxu1 %vm246_vm1, %v221_v30 }
 0x1e3   :  { %v542_v35 = vpop.f32.mrb[0].mxu1 }
 0x1e4   :  { %v743_v36 = vadd.f32 %v542_v35, %v234_v33  ;;  %v325_v37 = vpop.f32.mrb[1].mxu1 }
 0x1e5   :  { %v745_v38 = vadd.f32 %v325_v37, %v229_v34 }
 0x1e6   :  { %v345_v39 = vand.u32 2147483647, %v743_v36  ;;  %vm361_vm7 = vcmp.ge.f32.partialorder %v743_v36, 0.0 }
 0x1e7   :  { %v344_v41 = vand.u32 2147483647, %v745_v38  ;;  %v545_v42 = vpop.f32.mrb[2].mxu1  ;;  %vm360_vm8 = vcmp.ge.f32.partialorder %v745_v38, 0.0 }
 0x1e8   :  { %v349_v44 = vsub.f32 0.0, %v345_v39  ;;  %v749_v45 = vadd.f32 %v545_v42, %v244_v40  ;;  %v335_v46 = vpop.f32.mrb[3].mxu1 }
 0x1e9   :  { %v348_v47 = vsub.f32 0.0, %v344_v41  ;;  %v751_v48 = vadd.f32 %v335_v46, %v239_v43 }
 0x1ea   :  { %v354_v49 = vmul.f32 1.442695, %v349_v44  ;;  %v347_v50 = vand.u32 2147483647, %v749_v45  ;;  %vm363_vm9 = vcmp.ge.f32.partialorder %v749_v45, 0.0 }
 0x1eb   :  { %v352_v51 = vmul.f32 1.442695, %v348_v47  ;;  %v346_v52 = vand.u32 2147483647, %v751_v48  ;;  %vm362_vm10 = vcmp.ge.f32.partialorder %v751_v48, 0.0 }
 0x1ec   :  { %597 = vpow2.f32 %v354_v49  ;;  %v351_v53 = vsub.f32 0.0, %v347_v50 }
 0x1ed   :  { %599 = vpow2.f32 %v352_v51  ;;  %v350_v54 = vsub.f32 0.0, %v346_v52 }
 0x1ee   :  { %v358_v55 = vmul.f32 1.442695, %v351_v53 }
 0x1ef   :  { %v356_v56 = vmul.f32 1.442695, %v350_v54 }
 0x1f0   :  { %601 = vpow2.f32 %v358_v55 }
 0x1f1   :  { %603 = vpow2.f32 %v356_v56 }
 0x1f6   :  { %v598_v57 = vpop.eup %597 }
 0x1f7   :  { %v600_v58 = vpop.eup %599  ;;  %v365_v59 = vmul.f32 2.0, %v598_v57  ;;  %v373_v60 = vadd.f32 2.0, %v598_v57 }
 0x1f8   :  { %v364_v61 = vmul.f32 2.0, %v600_v58  ;;  %v372_v62 = vadd.f32 2.0, %v600_v58 }
 0x1f9   :  { %v369_v63 = vadd.f32 1.0, %v365_v59  ;;  %v377_v0 = vmul.f32 %v598_v57, %v373_v60  ;;  %v385_v1 = vmul.f32 %v598_v57, %v365_v59 }
 0x1fa   :  { %v602_v2 = vpop.eup %601  ;;  %v368_v3 = vadd.f32 1.0, %v364_v61  ;;  %v376_v4 = vmul.f32 %v600_v58, %v372_v62  ;;  %v384_v5 = vmul.f32 %v600_v58, %v364_v61 }
 0x1fb   :  { %v604_v6 = vpop.eup %603  ;;  %v381_v7 = vsel %vm361_vm7, %v369_v63, %v377_v0  ;;  %v389_v8 = vsel %vm361_vm7, %v385_v1, 2.0  ;;  %v367_v9 = vmul.f32 2.0, %v602_v2  ;;  %v375_v10 = vadd.f32 2.0, %v602_v2 }
 0x1fc   :  { %v393_v11 = vadd.f32 %v389_v8, %v381_v7  ;;  %v380_v12 = vsel %vm360_vm8, %v368_v3, %v376_v4  ;;  %v388_v13 = vsel %vm360_vm8, %v384_v5, 2.0  ;;  %v366_v18 = vmul.f32 2.0, %v604_v6 }
 0x1fd   :  { %v392_v14 = vadd.f32 %v388_v13, %v380_v12  ;;  %v371_v15 = vadd.f32 1.0, %v367_v9  ;;  %v379_v16 = vmul.f32 %v602_v2, %v375_v10  ;;  %v387_v17 = vmul.f32 %v602_v2, %v367_v9 }
 0x1fe   :  { %605 = vrcp.f32 %v393_v11  ;;  %v374_v19 = vadd.f32 2.0, %v604_v6  ;;  %v370_v23 = vadd.f32 1.0, %v366_v18  ;;  %v386_v27 = vmul.f32 %v604_v6, %v366_v18 }
 0x1ff   :  { %607 = vrcp.f32 %v392_v14  ;;  %v383_v20 = vsel %vm363_vm9, %v371_v15, %v379_v16  ;;  %v391_v21 = vsel %vm363_vm9, %v387_v17, 2.0  ;;  %v397_v24 = vmul.f32 %v381_v7, %v743_v36  ;;  %v408_v36 = vld [vmem:[%s777_s5] sm:$0xff] }
 0x200   :  { %v378_v25 = vmul.f32 %v604_v6, %v374_v19  ;;  %v395_v26 = vadd.f32 %v391_v21, %v383_v20  ;;  %v390_v29 = vsel %vm362_vm10, %v386_v27, 2.0  ;;  %v396_v32 = vmul.f32 %v380_v12, %v745_v38  ;;  %v413_v38 = vpop.permute.xlu0 %412 }
 0x201   :  { %v399_v40 = vmul.f32 %v383_v20, %v749_v45 }
 0x202   :  { %v382_v28 = vsel %vm362_vm10, %v370_v23, %v378_v25  ;;  %609 = vrcp.f32 %v395_v26 }
 0x203   :  { %v394_v22 = vadd.f32 %v390_v29, %v382_v28  ;;  %v398_v42 = vmul.f32 %v382_v28, %v751_v48 }
 0x205   :  { %611 = vrcp.f32 %v394_v22 }
 0x208   :  { %v606_v30 = vpop.eup %605 }
 0x209   :  { %v608_v33 = vpop.eup %607  ;;  %v405_v34 = vmul.f32 %v606_v30, %v397_v24 }
 0x20a   :  { %v404_v35 = vmul.f32 %v608_v33, %v396_v32 }
 0x20c   :  { %v570_v37 = vpack.c.bf16 %v405_v34, %v404_v35  ;;  %v610_v39 = vpop.eup %609 }
 0x20d   :  { %v407_v41 = vmul.f32 %v610_v39, %v399_v40 }
 0x20e   :  { %571 = vmatpush3.bf16.msra.mxu0 %v570_v37 }
 0x20f   :  { %572 = vmatprep.subr.bf16.mxu0 %v614_v31  ;;  %v612_v43 = vpop.eup %611 }
 0x210   :  { %v406_v44 = vmul.f32 %v612_v43, %v398_v42 }
 0x212   :  { %v573_v46 = vpack.c.bf16 %v407_v41, %v406_v44 }
 0x214   :  { %574 = vmatpush3.bf16.msra.mxu0 %v573_v46 }
 0x217   :  { %555 = vmatmul.mubr.msk.f32.vlgmr.msra.gmra.mrb[4].mxu0 %vm246_vm1, %v408_v36 }
 0x2ea   :  { %v484_v47 = vpop.f32.mrb[4].mxu0 }
 0x2eb   :  { %v485_v45 = vadd.f32 %v484_v47, %v413_v38  ;;  %v556_v49 = vpop.f32.mrb[5].mxu0 }
 0x2ed   :  { %489 = vst.msk [vmem:[%s778_s7] sm:$0xff] %vm488_vm11, %v485_v45 }

</bundles_post_ra>
